<compile_context>
chip_gen: v5e
topology: v5e:2x2
jax: 0.10.0
libtpu: 0.0.40
codegen_flags: <defaults>
</compile_context>

<pallas_src>
import functools

import jax
import jax.numpy as jnp
from jax.experimental import pallas as pl
from jax.experimental.pallas import tpu as pltpu

N_HIDDEN = 128
N_OUT = 11
N_OUT_PADDED = 128  # lane-dense output width


def bid_kernel(x_ref, w1_ref, b1_ref, w2_ref, b2_ref, w3_ref, b3_ref, o_ref):
    # Whole MLP hot path runs in-kernel: 3 MXU matmuls, ReLUs, and the softmax.
    x = x_ref[...]

    h1 = jnp.dot(x, w1_ref[...], preferred_element_type=jnp.float32) + b1_ref[...]
    h1 = jnp.maximum(h1, 0.0)

    h2 = jnp.dot(h1.astype(w2_ref.dtype), w2_ref[...],
                 preferred_element_type=jnp.float32) + b2_ref[...]
    h2 = jnp.maximum(h2, 0.0)

    logits = jnp.dot(h2.astype(w3_ref.dtype), w3_ref[...],
                     preferred_element_type=jnp.float32) + b3_ref[...]

    # Numerically stable softmax over the (padded) last dim.  Padded columns have
    # logits == -1e30 (finite), so exp() underflows to exactly 0 and the real 11-way
    # softmax is unchanged.
    m = jnp.max(logits, axis=-1, keepdims=True)
    e = jnp.exp(logits - m)
    s = jnp.sum(e, axis=-1, keepdims=True)
    o_ref[...] = e * pl.reciprocal(s, approx=True)


def _pick_block(batch: int, block_b: int) -> int:
    """Cap the batch tile at B; for large B prefer >= 2 grid steps (v7x megacore)."""
    blk = min(block_b, batch)
    if batch >= 256 and batch // blk < 2:
        half = -(-batch // 2)                      # ceil(B/2)
        blk = min(batch, max(128, -(-half // 128) * 128))  # round up to a multiple of 128
    return blk


@functools.partial(jax.jit, static_argnames=("block_b", "use_bf16"))
def bid_network_forward(x, w1, b1, w2, b2, w3, b3, *, block_b=512, use_bf16=False):
    B, n_obs = x.shape
    blk = _pick_block(B, block_b)
    grid = (pl.cdiv(B, blk),)

    # Pad the 11-wide head to 128 lanes (zero weight columns, large-negative bias).
    w3p = jnp.pad(w3, ((0, 0), (0, N_OUT_PADDED - N_OUT)))
    b3p = jnp.pad(b3, ((0, 0), (0, N_OUT_PADDED - N_OUT)), constant_values=-1e30)

    if use_bf16:
        x = x.astype(jnp.bfloat16)
        w1 = w1.astype(jnp.bfloat16)
        w2 = w2.astype(jnp.bfloat16)
        w3p = w3p.astype(jnp.bfloat16)

    op_bytes = 2 if use_bf16 else 4
    flops = 2 * B * (n_obs * N_HIDDEN + N_HIDDEN * N_HIDDEN + N_HIDDEN * N_OUT_PADDED)
    bytes_accessed = (
        B * n_obs * op_bytes                      # x
        + B * N_OUT_PADDED * 4                    # padded output
        + (n_obs * N_HIDDEN + N_HIDDEN * N_HIDDEN + N_HIDDEN * N_OUT_PADDED) * op_bytes
        + (2 * N_HIDDEN + N_OUT_PADDED) * 4       # biases
    )
    cost = pl.CostEstimate(flops=flops,
                           transcendentals=B * (N_OUT_PADDED + 1),
                           bytes_accessed=bytes_accessed)

    out_padded = pl.pallas_call(
        bid_kernel,
        out_shape=jax.ShapeDtypeStruct((B, N_OUT_PADDED), jnp.float32),
        grid_spec=pltpu.PrefetchScalarGridSpec(
            num_scalar_prefetch=0,
            grid=grid,
            in_specs=[
                pl.BlockSpec((blk, n_obs),              lambda i: (i, 0)),  # x tile
                pl.BlockSpec((n_obs, N_HIDDEN),         lambda i: (0, 0)),  # W1 (full)
                pl.BlockSpec((1, N_HIDDEN),             lambda i: (0, 0)),  # b1
                pl.BlockSpec((N_HIDDEN, N_HIDDEN),      lambda i: (0, 0)),  # W2 (full)
                pl.BlockSpec((1, N_HIDDEN),             lambda i: (0, 0)),  # b2
                pl.BlockSpec((N_HIDDEN, N_OUT_PADDED),  lambda i: (0, 0)),  # W3 (padded)
                pl.BlockSpec((1, N_OUT_PADDED),         lambda i: (0, 0)),  # b3 (padded)
            ],
            out_specs=pl.BlockSpec((blk, N_OUT_PADDED), lambda i: (i, 0)),
        ),
        compiler_params=pltpu.CompilerParams(
            dimension_semantics=("parallel",),
        ),
        cost_estimate=cost,
    )(x, w1, b1, w2, b2, w3p, b3p)

    return out_padded[:, :N_OUT]


def init_params(key, n_obs):
    # Deterministic init mimicking PyTorch Linear default: U(-1/sqrt(fan_in), 1/sqrt(fan_in)).
    ks = jax.random.split(key, 6)

    def lin(kw, kb, fan_in, fan_out):
        bound = 1.0 / jnp.sqrt(fan_in)
        w = jax.random.uniform(kw, (fan_in, fan_out), jnp.float32, -bound, bound)
        b = jax.random.uniform(kb, (1, fan_out), jnp.float32, -bound, bound)
        return w, b

    w1, b1 = lin(ks[0], ks[1], n_obs, N_HIDDEN)
    w2, b2 = lin(ks[2], ks[3], N_HIDDEN, N_HIDDEN)
    w3, b3 = lin(ks[4], ks[5], N_HIDDEN, N_OUT)
    return w1, b1, w2, b2, w3, b3


def reference_forward(x, w1, b1, w2, b2, w3, b3):
    h1 = jnp.maximum(x @ w1 + b1, 0.0)
    h2 = jnp.maximum(h1 @ w2 + b2, 0.0)
    logits = h2 @ w3 + b3
    return jax.nn.softmax(logits, axis=-1)


if __name__ == "__main__":
    key = jax.random.PRNGKey(0)
    k_params, k_x, k_x2 = jax.random.split(key, 3)

    n_obs = 32   # small synthetic observation size
    batch = 8

    params = init_params(k_params, n_obs)
    x = jax.random.normal(k_x, (batch, n_obs), jnp.float32)

    # f32 path, single tile.
    out = jax.block_until_ready(bid_network_forward(x, *params))
    ref = reference_forward(x, *params)
    assert out.shape == (batch, N_OUT)
    assert jnp.allclose(out, ref, atol=2e-3, rtol=2e-3), "f32 mismatch vs reference"
    assert jnp.allclose(jnp.sum(out, axis=-1), 1.0, atol=5e-3), "softmax rows must sum to 1"

    # bf16-operand path (v6e/v7x fast path); accumulation/softmax stay f32.
    out_bf16 = jax.block_until_ready(bid_network_forward(x, *params, use_bf16=True))
    assert jnp.allclose(out_bf16, ref, atol=3e-2, rtol=3e-2), "bf16 mismatch vs reference"

    # Larger batch: exercises >=2 grid steps (megacore sharding) and a partial last tile.
    batch2 = 300
    x2 = jax.random.normal(k_x2, (batch2, n_obs), jnp.float32)
    out2 = jax.block_until_ready(bid_network_forward(x2, *params))
    ref2 = reference_forward(x2, *params)
    assert out2.shape == (batch2, N_OUT)
    assert jnp.allclose(out2, ref2, atol=2e-3, rtol=2e-3), "multi-tile mismatch vs reference"

    print("KERNEL_OK")
</pallas_src>

<mosaic_0001>
module attributes {stable_mosaic.version = 11 : i64} {
  func.func @bid_kernel(%arg0: i32, %arg1: memref<8x32xf32, #tpu.memory_space<vmem>>, %arg2: memref<32x128xf32, #tpu.memory_space<vmem>>, %arg3: memref<1x128xf32, #tpu.memory_space<vmem>>, %arg4: memref<128x128xf32, #tpu.memory_space<vmem>>, %arg5: memref<1x128xf32, #tpu.memory_space<vmem>>, %arg6: memref<128x128xf32, #tpu.memory_space<vmem>>, %arg7: memref<1x128xf32, #tpu.memory_space<vmem>>, %arg8: memref<8x128xf32, #tpu.memory_space<vmem>>) attributes {dimension_semantics = [#tpu.dimension_semantics<parallel>], iteration_bounds = array<i64: 1>, scalar_prefetch = 0 : i64, scratch_operands = 0 : i64, tpu.core_type = #tpu.core_type<tc>, window_params = [{transform_indices = @transform_0, window_bounds = array<i64: 8, 32>}, {pipeline_mode = #tpu.pipeline_mode<synchronous>, transform_indices = @transform_1, window_bounds = array<i64: 32, 128>}, {pipeline_mode = #tpu.pipeline_mode<synchronous>, transform_indices = @transform_2, window_bounds = array<i64: 1, 128>}, {pipeline_mode = #tpu.pipeline_mode<synchronous>, transform_indices = @transform_3, window_bounds = array<i64: 128, 128>}, {pipeline_mode = #tpu.pipeline_mode<synchronous>, transform_indices = @transform_4, window_bounds = array<i64: 1, 128>}, {pipeline_mode = #tpu.pipeline_mode<synchronous>, transform_indices = @transform_5, window_bounds = array<i64: 128, 128>}, {pipeline_mode = #tpu.pipeline_mode<synchronous>, transform_indices = @transform_6, window_bounds = array<i64: 1, 128>}, {transform_indices = @transform_7, window_bounds = array<i64: 8, 128>}]} {
    %c0 = arith.constant 0 : index
    %c0_0 = arith.constant 0 : index
    %0 = vector.load %arg1[%c0, %c0_0] : memref<8x32xf32, #tpu.memory_space<vmem>>, vector<8x32xf32>
    %c0_1 = arith.constant 0 : index
    %c0_2 = arith.constant 0 : index
    %1 = vector.load %arg2[%c0_1, %c0_2] : memref<32x128xf32, #tpu.memory_space<vmem>>, vector<32x128xf32>
    %cst = arith.constant dense<0.000000e+00> : vector<8x128xf32>
    %2 = tpu.matmul %0, %1, %cst {dimension_numbers = #tpu.dot_dimension_numbers<[1], [0], [0], [1], [0, 0, 1, 1], [], []>} : vector<8x32xf32>, vector<32x128xf32>, vector<8x128xf32> -> vector<8x128xf32>
    %c0_3 = arith.constant 0 : index
    %c0_4 = arith.constant 0 : index
    %3 = vector.load %arg3[%c0_3, %c0_4] : memref<1x128xf32, #tpu.memory_space<vmem>>, vector<1x128xf32>
    %4 = vector.broadcast %3 : vector<1x128xf32> to vector<8x128xf32>
    %5 = arith.addf %2, %4 : vector<8x128xf32>
    %cst_5 = arith.constant 0.000000e+00 : f32
    %6 = vector.broadcast %cst_5 : f32 to vector<8x128xf32>
    %7 = arith.maximumf %5, %6 : vector<8x128xf32>
    %c0_6 = arith.constant 0 : index
    %c0_7 = arith.constant 0 : index
    %8 = vector.load %arg4[%c0_6, %c0_7] : memref<128x128xf32, #tpu.memory_space<vmem>>, vector<128x128xf32>
    %cst_8 = arith.constant dense<0.000000e+00> : vector<8x128xf32>
    %9 = tpu.matmul %7, %8, %cst_8 {dimension_numbers = #tpu.dot_dimension_numbers<[1], [0], [0], [1], [0, 0, 1, 1], [], []>} : vector<8x128xf32>, vector<128x128xf32>, vector<8x128xf32> -> vector<8x128xf32>
    %c0_9 = arith.constant 0 : index
    %c0_10 = arith.constant 0 : index
    %10 = vector.load %arg5[%c0_9, %c0_10] : memref<1x128xf32, #tpu.memory_space<vmem>>, vector<1x128xf32>
    %11 = vector.broadcast %10 : vector<1x128xf32> to vector<8x128xf32>
    %12 = arith.addf %9, %11 : vector<8x128xf32>
    %cst_11 = arith.constant 0.000000e+00 : f32
    %13 = vector.broadcast %cst_11 : f32 to vector<8x128xf32>
    %14 = arith.maximumf %12, %13 : vector<8x128xf32>
    %c0_12 = arith.constant 0 : index
    %c0_13 = arith.constant 0 : index
    %15 = vector.load %arg6[%c0_12, %c0_13] : memref<128x128xf32, #tpu.memory_space<vmem>>, vector<128x128xf32>
    %cst_14 = arith.constant dense<0.000000e+00> : vector<8x128xf32>
    %16 = tpu.matmul %14, %15, %cst_14 {dimension_numbers = #tpu.dot_dimension_numbers<[1], [0], [0], [1], [0, 0, 1, 1], [], []>} : vector<8x128xf32>, vector<128x128xf32>, vector<8x128xf32> -> vector<8x128xf32>
    %c0_15 = arith.constant 0 : index
    %c0_16 = arith.constant 0 : index
    %17 = vector.load %arg7[%c0_15, %c0_16] : memref<1x128xf32, #tpu.memory_space<vmem>>, vector<1x128xf32>
    %18 = vector.broadcast %17 : vector<1x128xf32> to vector<8x128xf32>
    %19 = arith.addf %16, %18 : vector<8x128xf32>
    %cst_17 = arith.constant dense<0xFF800000> : vector<8xf32>
    %20 = vector.multi_reduction <maximumf>, %19, %cst_17 [1] : vector<8x128xf32> to vector<8xf32>
    %21 = vector.shape_cast %20 : vector<8xf32> to vector<8x1xf32>
    %22 = vector.broadcast %21 : vector<8x1xf32> to vector<8x128xf32>
    %23 = arith.subf %19, %22 : vector<8x128xf32>
    %24 = math.exp %23 : vector<8x128xf32>
    %cst_18 = arith.constant dense<0.000000e+00> : vector<8xf32>
    %25 = vector.multi_reduction <add>, %24, %cst_18 [1] : vector<8x128xf32> to vector<8xf32>
    %26 = vector.shape_cast %25 : vector<8xf32> to vector<8x1xf32>
    %27 = tpu.reciprocal %26 {approx = true} : vector<8x1xf32> -> vector<8x1xf32>
    %28 = vector.broadcast %27 : vector<8x1xf32> to vector<8x128xf32>
    %29 = arith.mulf %24, %28 : vector<8x128xf32>
    %c0_19 = arith.constant 0 : index
    %c0_20 = arith.constant 0 : index
    %30 = vector.load %arg8[%c0_19, %c0_20] : memref<8x128xf32, #tpu.memory_space<vmem>>, vector<8x128xf32>
    tpu.vector_store %arg8[%c0_19, %c0_20], %29 {strides = array<i32>} : memref<8x128xf32, #tpu.memory_space<vmem>>, vector<8x128xf32>,
    return
  }
  func.func @transform_0(%arg0: i32) -> (i32, i32) {
    %c0_i32 = arith.constant 0 : i32
    %c0_i32_0 = arith.constant 0 : i32
    return %arg0, %c0_i32 : i32, i32
  }
  func.func @transform_1(%arg0: i32) -> (i32, i32) {
    %c0_i32 = arith.constant 0 : i32
    %c0_i32_0 = arith.constant 0 : i32
    %c0_i32_1 = arith.constant 0 : i32
    return %c0_i32, %c0_i32_0 : i32, i32
  }
  func.func @transform_2(%arg0: i32) -> (i32, i32) {
    %c0_i32 = arith.constant 0 : i32
    %c0_i32_0 = arith.constant 0 : i32
    %c0_i32_1 = arith.constant 0 : i32
    return %c0_i32, %c0_i32_0 : i32, i32
  }
  func.func @transform_3(%arg0: i32) -> (i32, i32) {
    %c0_i32 = arith.constant 0 : i32
    %c0_i32_0 = arith.constant 0 : i32
    %c0_i32_1 = arith.constant 0 : i32
    return %c0_i32, %c0_i32_0 : i32, i32
  }
  func.func @transform_4(%arg0: i32) -> (i32, i32) {
    %c0_i32 = arith.constant 0 : i32
    %c0_i32_0 = arith.constant 0 : i32
    %c0_i32_1 = arith.constant 0 : i32
    return %c0_i32, %c0_i32_0 : i32, i32
  }
  func.func @transform_5(%arg0: i32) -> (i32, i32) {
    %c0_i32 = arith.constant 0 : i32
    %c0_i32_0 = arith.constant 0 : i32
    %c0_i32_1 = arith.constant 0 : i32
    return %c0_i32, %c0_i32_0 : i32, i32
  }
  func.func @transform_6(%arg0: i32) -> (i32, i32) {
    %c0_i32 = arith.constant 0 : i32
    %c0_i32_0 = arith.constant 0 : i32
    %c0_i32_1 = arith.constant 0 : i32
    return %c0_i32, %c0_i32_0 : i32, i32
  }
  func.func @transform_7(%arg0: i32) -> (i32, i32) {
    %c0_i32 = arith.constant 0 : i32
    %c0_i32_0 = arith.constant 0 : i32
    return %arg0, %c0_i32 : i32, i32
  }
}

</mosaic_0001>

<bundles_post_ra>
// kernel: bid_network_forward.1
= control target key start
LH: loop header
LB: loop body
LE: loop exit
PB: predicated region body
PF: predicated region fallthrough
CT: control target
= control target key end

     0   :  { %vm36_vm0 = vcmask 261120   ;;  %s367_s0 = inlined_call_operand.vmem [shape: f32[8,32], index: 0, kind: input, shape index: {}]   ;;  %s368_s1 = inlined_call_operand.vmem [shape: f32[32,128], index: 1, kind: input, shape index: {}]   ;;  %s369_s2 = inlined_call_operand.vmem [shape: f32[1,128], index: 2, kind: input, shape index: {}]   ;;  %s370_s3 = inlined_call_operand.vmem [shape: f32[128,128], index: 3, kind: input, shape index: {}]   ;;  %s371_s4 = inlined_call_operand.vmem [shape: f32[1,128], index: 4, kind: input, shape index: {}]   ;;  %s372_s5 = inlined_call_operand.vmem [shape: f32[128,128], index: 5, kind: input, shape index: {}]   ;;  %s373_s6 = inlined_call_operand.vmem [shape: f32[1,128], index: 6, kind: input, shape index: {}]   ;;  %s374_s7 = inlined_call_operand.hbm [shape: f32[8,128], index: 7, kind: output, shape index: {}]  }
   0x1   :  { %v31_v0 = vld [vmem:[%s368_s1 + $0x18] sm:$0xff]  ;;  %v30_v1 = vld [vmem:[%s368_s1 + $0x10] sm:$0xff]  ;;  %v29_v3 = vld [vmem:[%s368_s1 + $0x8] sm:$0xff] }
   0x2   :  { %52 = vmatpush.msra.mxu0 %v31_v0  ;;  %v76_v2 = vld [vmem:[%s370_s3 + $0x78] sm:$0xff]  ;;  %v75_v4 = vld [vmem:[%s370_s3 + $0x70] sm:$0xff]  ;;  %v74_v5 = vld [vmem:[%s370_s3 + $0x68] sm:$0xff] }
   0x3   :  { %81 = vmatpush.msra.mxu1 %v76_v2  ;;  %v28_v6 = vld [vmem:[%s368_s1] sm:$0xff]  ;;  %v72_v9 = vld [vmem:[%s370_s3 + $0x58] sm:$0xff] }
   0x4   :  { %53 = vmatpush.msra.mxu0 %v30_v1  ;;  %v27_v7 = vld [vmem:[%s367_s0] sm:$0xff] }
   0x5   :  { %82 = vmatpush.msra.mxu1 %v75_v4  ;;  %v73_v8 = vld [vmem:[%s370_s3 + $0x60] sm:$0xff] }
   0x6   :  { %54 = vmatpush.msra.mxu0 %v29_v3 }
   0x7   :  { %83 = vmatpush.msra.mxu1 %v74_v5 }
   0x8   :  { %55 = vmatpush.msra.mxu0 %v28_v6 }
   0x9   :  { %12 = vsyncpa [#allocation3], 0  ;;  %168 = vmatmul.msk.f32.vlgmr.msra.gmra.mxu0 %vm36_vm0, %v27_v7  ;;  %84 = vmatpush.msra.mxu1 %v73_v8  ;;  %v71_v10 = vld [vmem:[%s370_s3 + $0x50] sm:$0xff]  ;;  %v70_v11 = vld [vmem:[%s370_s3 + $0x48] sm:$0xff]  ;;  %s159_s28 = sshll.u32 %s374_s7, 4  ;;  %s160_s28 = int_to_ptr.hbm [resolvable:$true] %s159_s28 }
   0xa   :  { %v69_v12 = vld [vmem:[%s370_s3 + $0x40] sm:$0xff]  ;;  %v68_v13 = vld [vmem:[%s370_s3 + $0x38] sm:$0xff]  ;;  %v67_v14 = vld [vmem:[%s370_s3 + $0x30] sm:$0xff] }
   0xb   :  { %85 = vmatpush.msra.mxu1 %v72_v9  ;;  %v66_v15 = vld [vmem:[%s370_s3 + $0x28] sm:$0xff]  ;;  %v65_v16 = vld [vmem:[%s370_s3 + $0x20] sm:$0xff]  ;;  %v64_v17 = vld [vmem:[%s370_s3 + $0x18] sm:$0xff] }
   0xc   :  { %v63_v18 = vld [vmem:[%s370_s3 + $0x10] sm:$0xff]  ;;  %v62_v19 = vld [vmem:[%s370_s3 + $0x8] sm:$0xff]  ;;  %v61_v20 = vld [vmem:[%s370_s3] sm:$0xff] }
   0xd   :  { %86 = vmatpush.msra.mxu1 %v71_v10  ;;  %v117_v21 = vld [vmem:[%s372_s5 + $0x78] sm:$0xff]  ;;  %v116_v22 = vld [vmem:[%s372_s5 + $0x70] sm:$0xff]  ;;  %v115_v23 = vld [vmem:[%s372_s5 + $0x68] sm:$0xff] }
   0xe   :  { %122 = vmatpush.msra.mxu2 %v117_v21  ;;  %v114_v24 = vld [vmem:[%s372_s5 + $0x60] sm:$0xff]  ;;  %v113_v25 = vld [vmem:[%s372_s5 + $0x58] sm:$0xff]  ;;  %v112_v26 = vld [vmem:[%s372_s5 + $0x50] sm:$0xff] }
   0xf   :  { %87 = vmatpush.msra.mxu1 %v70_v11  ;;  %v111_v27 = vld [vmem:[%s372_s5 + $0x48] sm:$0xff]  ;;  %v110_v28 = vld [vmem:[%s372_s5 + $0x40] sm:$0xff]  ;;  %v109_v29 = vld [vmem:[%s372_s5 + $0x38] sm:$0xff] }
  0x10   :  { %123 = vmatpush.msra.mxu2 %v116_v22  ;;  %v108_v30 = vld [vmem:[%s372_s5 + $0x30] sm:$0xff]  ;;  %v107_v31 = vld [vmem:[%s372_s5 + $0x28] sm:$0xff]  ;;  %v106_v32 = vld [vmem:[%s372_s5 + $0x20] sm:$0xff] }
  0x11   :  { %88 = vmatpush.msra.mxu1 %v69_v12  ;;  %v105_v33 = vld [vmem:[%s372_s5 + $0x18] sm:$0xff]  ;;  %v170_v34 = vld [vmem:[%s369_s2] ss:$0 sm:$0xff]  ;;  %v104_v38 = vld [vmem:[%s372_s5 + $0x10] sm:$0xff] }
  0x12   :  { %124 = vmatpush.msra.mxu2 %v115_v23  ;;  %v103_v39 = vld [vmem:[%s372_s5 + $0x8] sm:$0xff]  ;;  %v102_v40 = vld [vmem:[%s372_s5] sm:$0xff] }
  0x13   :  { %89 = vmatpush.msra.mxu1 %v68_v13  ;;  %v171_v41 = vld [vmem:[%s371_s4] ss:$0 sm:$0xff]  ;;  %s203_s4 = smov [#allocation2]  }
  0x14   :  { %125 = vmatpush.msra.mxu2 %v114_v24  ;;  %v172_v45 = vld [vmem:[%s373_s6] ss:$0 sm:$0xff]  ;;  %s157_s5 = sshll.u32 %s203_s4, 4  ;;  %s158_s5 = int_to_ptr.vmem [resolvable:$true] %s157_s5 }
  0x15   :  { %90 = vmatpush.msra.mxu1 %v67_v14 }
  0x16   :  { %126 = vmatpush.msra.mxu2 %v113_v25 }
  0x17   :  { %91 = vmatpush.msra.mxu1 %v66_v15 }
  0x18   :  { %127 = vmatpush.msra.mxu2 %v112_v26 }
  0x19   :  { %92 = vmatpush.msra.mxu1 %v65_v16 }
  0x1a   :  { %128 = vmatpush.msra.mxu2 %v111_v27 }
  0x1b   :  { %93 = vmatpush.msra.mxu1 %v64_v17 }
  0x1c   :  { %129 = vmatpush.msra.mxu2 %v110_v28 }
  0x1d   :  { %94 = vmatpush.msra.mxu1 %v63_v18 }
  0x1e   :  { %130 = vmatpush.msra.mxu2 %v109_v29 }
  0x1f   :  { %95 = vmatpush.msra.mxu1 %v62_v19 }
  0x20   :  { %131 = vmatpush.msra.mxu2 %v108_v30 }
  0x21   :  { %96 = vmatpush.msra.mxu1 %v61_v20 }
  0x22   :  { %132 = vmatpush.msra.mxu2 %v107_v31 }
  0x24   :  { %133 = vmatpush.msra.mxu2 %v106_v32 }
  0x26   :  { %134 = vmatpush.msra.mxu2 %v105_v33 }
  0x28   :  { %135 = vmatpush.msra.mxu2 %v104_v38 }
  0x2a   :  { %136 = vmatpush.msra.mxu2 %v103_v39 }
  0x2c   :  { %137 = vmatpush.msra.mxu2 %v102_v40 }
  0x86   :  { %v57_v35 = vpop.f32.mrf.mxu0 }
  0x87   :  { %v58_v36 = vadd.f32 %v170_v34, %v57_v35 }
  0x89   :  { %v60_v37 = vmax.f32 %v58_v36, 0.0 }
  0x8b   :  { %97 = vmatmul.f32.vlgmr.msra.gmra.mxu1 %v60_v37 }
 0x108   :  { %v98_v42 = vpop.f32.mrf.mxu1 }
 0x109   :  { %v99_v43 = vadd.f32 %v171_v41, %v98_v42 }
 0x10b   :  { %v101_v44 = vmax.f32 %v99_v43, 0.0 }
 0x10d   :  { %138 = vmatmul.f32.vlgmr.msra.gmra.mxu2 %v101_v44 }
 0x190   :  { %v139_v46 = vpop.f32.mrf.mxu2 }
 0x191   :  { %v140_v47 = vadd.f32 %v172_v45, %v139_v46 }
 0x193   :  { %142 = vmax.xlane.f32.xlu0 %v140_v47 }
 0x206   :  { %v143_v48 = vpop.xlane.xlu0 %142 }
 0x207   :  { %v144_v49 = vsub.f32 %v140_v47, %v143_v48 }
 0x209   :  { %v145_v50 = vmul.f32 1.442695, %v144_v49 }
 0x20b   :  { %173 = vpow2.f32 %v145_v50 }
 0x211   :  { %v174_v51 = vpop.eup %173 }
 0x212   :  { %147 = vadd.xlane.f32.xlu0 %v174_v51 }
 0x285   :  { %v148_v52 = vpop.xlane.xlu0 %147 }
 0x286   :  { %175 = vrcp.f32 %v148_v52 }
 0x28c   :  { %v176_v53 = vpop.eup %175 }
 0x28d   :  { %v150_v54 = vmul.f32 %v176_v53, %v174_v51 }
 0x28f   :  { %151 = vst [vmem:[#allocation2] sm:$0xff] %v150_v54 }
 0x290   :  { %162 = dma.vmem_to_hbm [thread:$0]  %s158_s5, 128, %s160_s28, [#allocation3]  }
 0x291   :  { %201 = dma.done.wait [#allocation3], 128  }
 0x292   :  { %202 = vsyncadd [#allocation3], 4294967168 }
 0x293   :  { %167 = vsyncpa [#allocation3], 1 }

</bundles_post_ra>
